<compile_context>
chip_gen: v7x
topology: tpu7x:2x2x1
jax: 0.10.0
libtpu: 0.0.40
codegen_flags: <defaults>
</compile_context>

<pallas_src>
import math
import functools

import jax
import jax.numpy as jnp
from jax import lax
from jax.experimental import pallas as pl
from jax.experimental.pallas import tpu as pltpu


# --------------------------- fused MHA kernel ------------------------------
def _mha_kernel(x_ref, wqkv_ref, bqkv_ref, wo_ref, bo_ref, mask_ref, o_ref,
                *, heads, d_k, d_model, scale):
    # ---- fused Q|K|V projection: (B*S, 3D) @ (3D, 3D) + (1, 3D) ----------
    qkv = jnp.dot(x_ref[...], wqkv_ref[...],
                  preferred_element_type=jnp.float32) + bqkv_ref[...]
    qp = qkv[:, :d_model]                       # (B*S, D)
    kp = qkv[:, d_model:2 * d_model]            # (B*S, D)
    vp = qkv[:, 2 * d_model:3 * d_model]        # (B*S, D)

    wo = wo_ref[...]                            # (D, D)
    bo = bo_ref[...]                            # (1, D)
    mask = mask_ref[...]                        # (B*S, B*S): 0 intra-batch,
                                                #             -inf cross-batch

    acc = None                                  # accumulates concat @ Wo
    for h in range(heads):
        c0 = h * d_k
        qh = qp[:, c0:c0 + d_k]                 # (B*S, d_k)
        kh = kp[:, c0:c0 + d_k]
        vh = vp[:, c0:c0 + d_k]

        # scores over ALL batch rows at once; contract last dims (no K^T).
        s = lax.dot_general(qh, kh,
                            dimension_numbers=(((1,), (1,)), ((), ())),
                            preferred_element_type=jnp.float32) * scale
        s = s + mask                            # kill cross-batch blocks
        s = s - jnp.max(s, axis=-1, keepdims=True)
        p = jnp.exp(s)                          # (B*S, B*S) unnormalized
        denom = jnp.sum(p, axis=-1, keepdims=True)

        o_h = jnp.dot(p, vh, preferred_element_type=jnp.float32)   # (B*S, d_k)
        # deferred softmax normalization on the (B*S, d_k) output.
        o_h = o_h * pl.reciprocal(denom, approx=False)

        # head-merge + output projection fused:
        #   concat @ Wo == sum_h concat[:, h*d_k:(h+1)*d_k] @ Wo[h*d_k:, :]
        contrib = jnp.dot(o_h, wo[c0:c0 + d_k, :],
                          preferred_element_type=jnp.float32)       # (B*S, D)
        acc = contrib if acc is None else acc + contrib

    # single full-ref store.
    o_ref[...] = (acc + bo).astype(o_ref.dtype)


def multi_head_attention(params, q, k, v, heads):
    """q, k, v: (B, S, D) float32 -> (B, S, D) float32, single pallas_call."""
    B, S, D = q.shape
    BS = B * S
    d_k = D // heads
    scale = 1.0 / math.sqrt(d_k)

    wq, bq = params["q"]
    wk, bk = params["k"]
    wv, bv = params["v"]
    wo, bo = params["out"]

    # Block-diagonal QKV weight (3D, 3D) + concatenated bias (1, 3D); built
    # once in the wrapper so the kernel does a single projection matmul.
    z = jnp.zeros((D, D), jnp.float32)
    wqkv = jnp.block([[wq, z, z],
                      [z, wk, z],
                      [z, z, wv]])
    bqkv = jnp.concatenate([bq, bk, bv]).reshape(1, 3 * D)

    # Concatenated activations X = [q | k | v] : (B*S, 3D)
    x = jnp.concatenate(
        [q.reshape(BS, D), k.reshape(BS, D), v.reshape(BS, D)], axis=1)

    # Additive cross-batch mask: 0 on intra-batch 8x8 blocks, -inf elsewhere.
    rb = jnp.arange(BS)[:, None] // S
    cb = jnp.arange(BS)[None, :] // S
    mask = jnp.where(rb == cb, 0.0, -jnp.inf).astype(jnp.float32)

    kernel = functools.partial(_mha_kernel, heads=heads, d_k=d_k,
                               d_model=D, scale=scale)
    vmem = pl.BlockSpec(memory_space=pltpu.MemorySpace.VMEM)

    # rough advisory cost for XLA scheduling (optional).
    flops = 2 * BS * (3 * D) * (3 * D) + heads * (
        2 * BS * BS * d_k * 2 + 2 * BS * d_k * D)
    bytes_accessed = 4 * (BS * 3 * D + 9 * D * D + 3 * D + D * D + D
                          + BS * BS + BS * D)
    cost = pl.CostEstimate(flops=flops,
                           transcendentals=heads * BS * BS,
                           bytes_accessed=bytes_accessed)

    out2d = pl.pallas_call(
        kernel,
        out_shape=jax.ShapeDtypeStruct((BS, D), q.dtype),
        in_specs=[vmem] * 6,
        out_specs=vmem,
        cost_estimate=cost,
    )(x, wqkv, bqkv, wo, bo.reshape(1, D), mask)
    return out2d.reshape(B, S, D)


# ------------------------------- params ------------------------------------
def init_mha_params(key, d_model):
    ks = jax.random.split(key, 8)

    def lin(kw, kb):
        w = jax.random.normal(kw, (d_model, d_model), jnp.float32) * 0.02
        b = jax.random.normal(kb, (d_model,), jnp.float32) * 0.02
        return w, b

    return {
        "q": lin(ks[0], ks[1]),
        "k": lin(ks[2], ks[3]),
        "v": lin(ks[4], ks[5]),
        "out": lin(ks[6], ks[7]),
    }


# ------------------------------ reference ----------------------------------
def reference_mha(params, q, k, v, heads):
    B, S, D = q.shape
    d_k = D // heads

    def proj(x, wb):
        w, b = wb
        return (x @ w + b).reshape(B, S, heads, d_k).transpose(0, 2, 1, 3)

    qh = proj(q, params["q"])
    kh = proj(k, params["k"])
    vh = proj(v, params["v"])
    s = jnp.einsum("bhqd,bhkd->bhqk", qh, kh) / math.sqrt(d_k)
    p = jax.nn.softmax(s, axis=-1)
    o = jnp.einsum("bhqk,bhkd->bhqd", p, vh)
    concat = o.transpose(0, 2, 1, 3).reshape(B, S, D)
    w_o, b_o = params["out"]
    return concat @ w_o + b_o


# --------------------------------- main -------------------------------------
if __name__ == "__main__":
    B, S, D, H = 2, 8, 32, 4
    key = jax.random.PRNGKey(0)
    kq, kk, kv, kp = jax.random.split(key, 4)
    q = jax.random.normal(kq, (B, S, D), jnp.float32)
    k = jax.random.normal(kk, (B, S, D), jnp.float32)
    v = jax.random.normal(kv, (B, S, D), jnp.float32)
    params = init_mha_params(kp, D)

    out = multi_head_attention(params, q, k, v, H)
    out = jax.block_until_ready(out)

    ref_out = reference_mha(params, q, k, v, H)
    assert jnp.allclose(out, ref_out, atol=1e-5, rtol=1e-5)

    print("KERNEL_OK")
</pallas_src>

<mosaic_0001>
module attributes {stable_mosaic.version = 11 : i64} {
  func.func @_mha_kernel(%arg0: memref<16x96xf32, #tpu.memory_space<vmem>>, %arg1: memref<96x96xf32, #tpu.memory_space<vmem>>, %arg2: memref<1x96xf32, #tpu.memory_space<vmem>>, %arg3: memref<32x32xf32, #tpu.memory_space<vmem>>, %arg4: memref<1x32xf32, #tpu.memory_space<vmem>>, %arg5: memref<16x16xf32, #tpu.memory_space<vmem>>, %arg6: memref<16x32xf32, #tpu.memory_space<vmem>>) attributes {dimension_semantics = [], scalar_prefetch = 0 : i64, scratch_operands = 0 : i64, tpu.core_type = #tpu.core_type<tc>} {
    %c0 = arith.constant 0 : index
    %c0_0 = arith.constant 0 : index
    %0 = vector.load %arg0[%c0, %c0_0] : memref<16x96xf32, #tpu.memory_space<vmem>>, vector<16x96xf32>
    %c0_1 = arith.constant 0 : index
    %c0_2 = arith.constant 0 : index
    %1 = vector.load %arg1[%c0_1, %c0_2] : memref<96x96xf32, #tpu.memory_space<vmem>>, vector<96x96xf32>
    %cst = arith.constant dense<0.000000e+00> : vector<16x96xf32>
    %2 = tpu.matmul %0, %1, %cst {dimension_numbers = #tpu.dot_dimension_numbers<[1], [0], [0], [1], [0, 0, 1, 1], [], []>} : vector<16x96xf32>, vector<96x96xf32>, vector<16x96xf32> -> vector<16x96xf32>
    %c0_3 = arith.constant 0 : index
    %c0_4 = arith.constant 0 : index
    %3 = vector.load %arg2[%c0_3, %c0_4] : memref<1x96xf32, #tpu.memory_space<vmem>>, vector<1x96xf32>
    %4 = vector.broadcast %3 : vector<1x96xf32> to vector<16x96xf32>
    %5 = arith.addf %2, %4 : vector<16x96xf32>
    %6 = vector.extract_strided_slice %5 {offsets = [0, 0], sizes = [16, 32], strides = [1, 1]} : vector<16x96xf32> to vector<16x32xf32>
    %7 = vector.extract_strided_slice %5 {offsets = [0, 32], sizes = [16, 32], strides = [1, 1]} : vector<16x96xf32> to vector<16x32xf32>
    %8 = vector.extract_strided_slice %5 {offsets = [0, 64], sizes = [16, 32], strides = [1, 1]} : vector<16x96xf32> to vector<16x32xf32>
    %c0_5 = arith.constant 0 : index
    %c0_6 = arith.constant 0 : index
    %9 = vector.load %arg3[%c0_5, %c0_6] : memref<32x32xf32, #tpu.memory_space<vmem>>, vector<32x32xf32>
    %c0_7 = arith.constant 0 : index
    %c0_8 = arith.constant 0 : index
    %10 = vector.load %arg4[%c0_7, %c0_8] : memref<1x32xf32, #tpu.memory_space<vmem>>, vector<1x32xf32>
    %c0_9 = arith.constant 0 : index
    %c0_10 = arith.constant 0 : index
    %11 = vector.load %arg5[%c0_9, %c0_10] : memref<16x16xf32, #tpu.memory_space<vmem>>, vector<16x16xf32>
    %12 = vector.extract_strided_slice %6 {offsets = [0, 0], sizes = [16, 8], strides = [1, 1]} : vector<16x32xf32> to vector<16x8xf32>
    %13 = vector.extract_strided_slice %7 {offsets = [0, 0], sizes = [16, 8], strides = [1, 1]} : vector<16x32xf32> to vector<16x8xf32>
    %14 = vector.extract_strided_slice %8 {offsets = [0, 0], sizes = [16, 8], strides = [1, 1]} : vector<16x32xf32> to vector<16x8xf32>
    %cst_11 = arith.constant dense<0.000000e+00> : vector<16x16xf32>
    %15 = tpu.matmul %12, %13, %cst_11 {dimension_numbers = #tpu.dot_dimension_numbers<[1], [1], [0], [0], [0, 0, 1, 0], [], []>} : vector<16x8xf32>, vector<16x8xf32>, vector<16x16xf32> -> vector<16x16xf32>
    %cst_12 = arith.constant 0.353553385 : f32
    %16 = vector.broadcast %cst_12 : f32 to vector<16x16xf32>
    %17 = arith.mulf %15, %16 : vector<16x16xf32>
    %18 = arith.addf %17, %11 : vector<16x16xf32>
    %cst_13 = arith.constant dense<0xFF800000> : vector<16xf32>
    %19 = vector.multi_reduction <maximumf>, %18, %cst_13 [1] : vector<16x16xf32> to vector<16xf32>
    %20 = vector.shape_cast %19 : vector<16xf32> to vector<16x1xf32>
    %21 = vector.broadcast %20 : vector<16x1xf32> to vector<16x16xf32>
    %22 = arith.subf %18, %21 : vector<16x16xf32>
    %23 = math.exp %22 : vector<16x16xf32>
    %cst_14 = arith.constant dense<0.000000e+00> : vector<16xf32>
    %24 = vector.multi_reduction <add>, %23, %cst_14 [1] : vector<16x16xf32> to vector<16xf32>
    %25 = vector.shape_cast %24 : vector<16xf32> to vector<16x1xf32>
    %cst_15 = arith.constant dense<0.000000e+00> : vector<16x8xf32>
    %26 = tpu.matmul %23, %14, %cst_15 {dimension_numbers = #tpu.dot_dimension_numbers<[1], [0], [0], [1], [0, 0, 1, 1], [], []>} : vector<16x16xf32>, vector<16x8xf32>, vector<16x8xf32> -> vector<16x8xf32>
    %27 = tpu.reciprocal %25 : vector<16x1xf32> -> vector<16x1xf32>
    %28 = vector.broadcast %27 : vector<16x1xf32> to vector<16x8xf32>
    %29 = arith.mulf %26, %28 : vector<16x8xf32>
    %30 = vector.extract_strided_slice %9 {offsets = [0, 0], sizes = [8, 32], strides = [1, 1]} : vector<32x32xf32> to vector<8x32xf32>
    %cst_16 = arith.constant dense<0.000000e+00> : vector<16x32xf32>
    %31 = tpu.matmul %29, %30, %cst_16 {dimension_numbers = #tpu.dot_dimension_numbers<[1], [0], [0], [1], [0, 0, 1, 1], [], []>} : vector<16x8xf32>, vector<8x32xf32>, vector<16x32xf32> -> vector<16x32xf32>
    %32 = vector.extract_strided_slice %6 {offsets = [0, 8], sizes = [16, 8], strides = [1, 1]} : vector<16x32xf32> to vector<16x8xf32>
    %33 = vector.extract_strided_slice %7 {offsets = [0, 8], sizes = [16, 8], strides = [1, 1]} : vector<16x32xf32> to vector<16x8xf32>
    %34 = vector.extract_strided_slice %8 {offsets = [0, 8], sizes = [16, 8], strides = [1, 1]} : vector<16x32xf32> to vector<16x8xf32>
    %cst_17 = arith.constant dense<0.000000e+00> : vector<16x16xf32>
    %35 = tpu.matmul %32, %33, %cst_17 {dimension_numbers = #tpu.dot_dimension_numbers<[1], [1], [0], [0], [0, 0, 1, 0], [], []>} : vector<16x8xf32>, vector<16x8xf32>, vector<16x16xf32> -> vector<16x16xf32>
    %cst_18 = arith.constant 0.353553385 : f32
    %36 = vector.broadcast %cst_18 : f32 to vector<16x16xf32>
    %37 = arith.mulf %35, %36 : vector<16x16xf32>
    %38 = arith.addf %37, %11 : vector<16x16xf32>
    %cst_19 = arith.constant dense<0xFF800000> : vector<16xf32>
    %39 = vector.multi_reduction <maximumf>, %38, %cst_19 [1] : vector<16x16xf32> to vector<16xf32>
    %40 = vector.shape_cast %39 : vector<16xf32> to vector<16x1xf32>
    %41 = vector.broadcast %40 : vector<16x1xf32> to vector<16x16xf32>
    %42 = arith.subf %38, %41 : vector<16x16xf32>
    %43 = math.exp %42 : vector<16x16xf32>
    %cst_20 = arith.constant dense<0.000000e+00> : vector<16xf32>
    %44 = vector.multi_reduction <add>, %43, %cst_20 [1] : vector<16x16xf32> to vector<16xf32>
    %45 = vector.shape_cast %44 : vector<16xf32> to vector<16x1xf32>
    %cst_21 = arith.constant dense<0.000000e+00> : vector<16x8xf32>
    %46 = tpu.matmul %43, %34, %cst_21 {dimension_numbers = #tpu.dot_dimension_numbers<[1], [0], [0], [1], [0, 0, 1, 1], [], []>} : vector<16x16xf32>, vector<16x8xf32>, vector<16x8xf32> -> vector<16x8xf32>
    %47 = tpu.reciprocal %45 : vector<16x1xf32> -> vector<16x1xf32>
    %48 = vector.broadcast %47 : vector<16x1xf32> to vector<16x8xf32>
    %49 = arith.mulf %46, %48 : vector<16x8xf32>
    %50 = vector.extract_strided_slice %9 {offsets = [8, 0], sizes = [8, 32], strides = [1, 1]} : vector<32x32xf32> to vector<8x32xf32>
    %cst_22 = arith.constant dense<0.000000e+00> : vector<16x32xf32>
    %51 = tpu.matmul %49, %50, %cst_22 {dimension_numbers = #tpu.dot_dimension_numbers<[1], [0], [0], [1], [0, 0, 1, 1], [], []>} : vector<16x8xf32>, vector<8x32xf32>, vector<16x32xf32> -> vector<16x32xf32>
    %52 = arith.addf %31, %51 : vector<16x32xf32>
    %53 = vector.extract_strided_slice %6 {offsets = [0, 16], sizes = [16, 8], strides = [1, 1]} : vector<16x32xf32> to vector<16x8xf32>
    %54 = vector.extract_strided_slice %7 {offsets = [0, 16], sizes = [16, 8], strides = [1, 1]} : vector<16x32xf32> to vector<16x8xf32>
    %55 = vector.extract_strided_slice %8 {offsets = [0, 16], sizes = [16, 8], strides = [1, 1]} : vector<16x32xf32> to vector<16x8xf32>
    %cst_23 = arith.constant dense<0.000000e+00> : vector<16x16xf32>
    %56 = tpu.matmul %53, %54, %cst_23 {dimension_numbers = #tpu.dot_dimension_numbers<[1], [1], [0], [0], [0, 0, 1, 0], [], []>} : vector<16x8xf32>, vector<16x8xf32>, vector<16x16xf32> -> vector<16x16xf32>
    %cst_24 = arith.constant 0.353553385 : f32
    %57 = vector.broadcast %cst_24 : f32 to vector<16x16xf32>
    %58 = arith.mulf %56, %57 : vector<16x16xf32>
    %59 = arith.addf %58, %11 : vector<16x16xf32>
    %cst_25 = arith.constant dense<0xFF800000> : vector<16xf32>
    %60 = vector.multi_reduction <maximumf>, %59, %cst_25 [1] : vector<16x16xf32> to vector<16xf32>
    %61 = vector.shape_cast %60 : vector<16xf32> to vector<16x1xf32>
    %62 = vector.broadcast %61 : vector<16x1xf32> to vector<16x16xf32>
    %63 = arith.subf %59, %62 : vector<16x16xf32>
    %64 = math.exp %63 : vector<16x16xf32>
    %cst_26 = arith.constant dense<0.000000e+00> : vector<16xf32>
    %65 = vector.multi_reduction <add>, %64, %cst_26 [1] : vector<16x16xf32> to vector<16xf32>
    %66 = vector.shape_cast %65 : vector<16xf32> to vector<16x1xf32>
    %cst_27 = arith.constant dense<0.000000e+00> : vector<16x8xf32>
    %67 = tpu.matmul %64, %55, %cst_27 {dimension_numbers = #tpu.dot_dimension_numbers<[1], [0], [0], [1], [0, 0, 1, 1], [], []>} : vector<16x16xf32>, vector<16x8xf32>, vector<16x8xf32> -> vector<16x8xf32>
    %68 = tpu.reciprocal %66 : vector<16x1xf32> -> vector<16x1xf32>
    %69 = vector.broadcast %68 : vector<16x1xf32> to vector<16x8xf32>
    %70 = arith.mulf %67, %69 : vector<16x8xf32>
    %71 = vector.extract_strided_slice %9 {offsets = [16, 0], sizes = [8, 32], strides = [1, 1]} : vector<32x32xf32> to vector<8x32xf32>
    %cst_28 = arith.constant dense<0.000000e+00> : vector<16x32xf32>
    %72 = tpu.matmul %70, %71, %cst_28 {dimension_numbers = #tpu.dot_dimension_numbers<[1], [0], [0], [1], [0, 0, 1, 1], [], []>} : vector<16x8xf32>, vector<8x32xf32>, vector<16x32xf32> -> vector<16x32xf32>
    %73 = arith.addf %52, %72 : vector<16x32xf32>
    %74 = vector.extract_strided_slice %6 {offsets = [0, 24], sizes = [16, 8], strides = [1, 1]} : vector<16x32xf32> to vector<16x8xf32>
    %75 = vector.extract_strided_slice %7 {offsets = [0, 24], sizes = [16, 8], strides = [1, 1]} : vector<16x32xf32> to vector<16x8xf32>
    %76 = vector.extract_strided_slice %8 {offsets = [0, 24], sizes = [16, 8], strides = [1, 1]} : vector<16x32xf32> to vector<16x8xf32>
    %cst_29 = arith.constant dense<0.000000e+00> : vector<16x16xf32>
    %77 = tpu.matmul %74, %75, %cst_29 {dimension_numbers = #tpu.dot_dimension_numbers<[1], [1], [0], [0], [0, 0, 1, 0], [], []>} : vector<16x8xf32>, vector<16x8xf32>, vector<16x16xf32> -> vector<16x16xf32>
    %cst_30 = arith.constant 0.353553385 : f32
    %78 = vector.broadcast %cst_30 : f32 to vector<16x16xf32>
    %79 = arith.mulf %77, %78 : vector<16x16xf32>
    %80 = arith.addf %79, %11 : vector<16x16xf32>
    %cst_31 = arith.constant dense<0xFF800000> : vector<16xf32>
    %81 = vector.multi_reduction <maximumf>, %80, %cst_31 [1] : vector<16x16xf32> to vector<16xf32>
    %82 = vector.shape_cast %81 : vector<16xf32> to vector<16x1xf32>
    %83 = vector.broadcast %82 : vector<16x1xf32> to vector<16x16xf32>
    %84 = arith.subf %80, %83 : vector<16x16xf32>
    %85 = math.exp %84 : vector<16x16xf32>
    %cst_32 = arith.constant dense<0.000000e+00> : vector<16xf32>
    %86 = vector.multi_reduction <add>, %85, %cst_32 [1] : vector<16x16xf32> to vector<16xf32>
    %87 = vector.shape_cast %86 : vector<16xf32> to vector<16x1xf32>
    %cst_33 = arith.constant dense<0.000000e+00> : vector<16x8xf32>
    %88 = tpu.matmul %85, %76, %cst_33 {dimension_numbers = #tpu.dot_dimension_numbers<[1], [0], [0], [1], [0, 0, 1, 1], [], []>} : vector<16x16xf32>, vector<16x8xf32>, vector<16x8xf32> -> vector<16x8xf32>
    %89 = tpu.reciprocal %87 : vector<16x1xf32> -> vector<16x1xf32>
    %90 = vector.broadcast %89 : vector<16x1xf32> to vector<16x8xf32>
    %91 = arith.mulf %88, %90 : vector<16x8xf32>
    %92 = vector.extract_strided_slice %9 {offsets = [24, 0], sizes = [8, 32], strides = [1, 1]} : vector<32x32xf32> to vector<8x32xf32>
    %cst_34 = arith.constant dense<0.000000e+00> : vector<16x32xf32>
    %93 = tpu.matmul %91, %92, %cst_34 {dimension_numbers = #tpu.dot_dimension_numbers<[1], [0], [0], [1], [0, 0, 1, 1], [], []>} : vector<16x8xf32>, vector<8x32xf32>, vector<16x32xf32> -> vector<16x32xf32>
    %94 = arith.addf %73, %93 : vector<16x32xf32>
    %95 = vector.broadcast %10 : vector<1x32xf32> to vector<16x32xf32>
    %96 = arith.addf %94, %95 : vector<16x32xf32>
    %c0_35 = arith.constant 0 : index
    %c0_36 = arith.constant 0 : index
    %97 = vector.load %arg6[%c0_35, %c0_36] : memref<16x32xf32, #tpu.memory_space<vmem>>, vector<16x32xf32>
    tpu.vector_store %arg6[%c0_35, %c0_36], %96 {strides = array<i32>} : memref<16x32xf32, #tpu.memory_space<vmem>>, vector<16x32xf32>,
    return
  }
}

</mosaic_0001>

<bundles_post_ra>
// kernel: tpu_custom_call.1
= control target key start
LH: loop header
LB: loop body
LE: loop exit
PB: predicated region body
PF: predicated region fallthrough
CT: control target
= control target key end

     0   :  { %11 = vsyncpa [#allocation3], 0  ;;  %s2041_s0 = inlined_call_operand.hbm [shape: f32[16,96], index: 0, kind: input, shape index: {}]   ;;  %s2042_s1 = inlined_call_operand.hbm [shape: f32[96,96], index: 1, kind: input, shape index: {}]   ;;  %s2043_s2 = inlined_call_operand.vmem [shape: f32[1,96], index: 2, kind: input, shape index: {}]   ;;  %s2044_s3 = inlined_call_operand.hbm [shape: f32[32,32], index: 3, kind: input, shape index: {}]   ;;  %s2045_s4 = inlined_call_operand.vmem [shape: f32[1,32], index: 4, kind: input, shape index: {}]   ;;  %s2046_s5 = inlined_call_operand.vmem [shape: f32[16,16], index: 5, kind: input, shape index: {}]   ;;  %s2047_s6 = inlined_call_operand.hbm [shape: f32[16,32], index: 6, kind: output, shape index: {}]  }
   0x1   :  { %12 = vsyncpa [#allocation6], 0 }
   0x2   :  { %13 = vsyncpa [#allocation4], 0  ;;  %s1798_s21 = smov [#allocation5]   ;;  %s1799_s23 = smov [#allocation2]  }
   0x3   :  { %s31_s22 = sshll.u32 %s1798_s21, 4  ;;  %s19_s24 = sshll.u32 %s1799_s23, 4  ;;  %s32_s22 = int_to_ptr.vmem [resolvable:$true] %s31_s22  ;;  %s1850_s24 = int_to_ptr.vmem [resolvable:$true] %s19_s24 }
   0x4   :  { %s1704_s27 = scalar_lea.hbm %s2042_s1, 1536 }
   0x5   :  { %p1705_p0 = scmp.ne.s32.totalorder %s2042_s1, %s1704_s27  ;;  %p1708_p1 = scmp.lt.u32.totalorder %s1704_s27, %s2042_s1 }
   0x7   :  { %p1710_p2 = pnand %p1708_p1, %p1705_p0 }
   0x9   :  { %1713 = shalt.err (!%p1710_p2)
}
   0xa   :  { %s1714_s8 = scalar_lea.vmem %s32_s22, 1536  ;;  %p1719_p4 = scmp.lt.s32.totalorder %s32_s22, %s32_s22 }
   0xb   :  { %p1715_p3 = scmp.ne.s32.totalorder %s32_s22, %s1714_s8  ;;  %p1720_p5 = scmp.lt.s32.totalorder %s1714_s8, %s1714_s8 }
   0xd   :  { %p1721_p6 = por %p1720_p5, %p1719_p4 }
   0xf   :  { %p1722_p7 = pnand %p1721_p6, %p1715_p3 }
  0x11   :  { %1725 = shalt.err (!%p1722_p7)
}
  0x12   :  { %s1800_s9 = smov 128   ;;  %s1801_s10 = smov 8  }
  0x13   :  { %37 = dma.hbm_to_vmem [thread:$0]  %s2042_s1, 1536, %s32_s22, [#allocation6], %s1800_s9, %s1800_s9, %s1801_s10  }
  0x14   :  { %s1726_s15 = scalar_lea.hbm %s2041_s0, 256 }
  0x15   :  { %p1727_p8 = scmp.ne.s32.totalorder %s2041_s0, %s1726_s15  ;;  %p1730_p9 = scmp.lt.u32.totalorder %s1726_s15, %s2041_s0 }
  0x17   :  { %p1732_p10 = pnand %p1730_p9, %p1727_p8 }
  0x19   :  { %1735 = shalt.err (!%p1732_p10)
}
  0x1a   :  { %s1736_s20 = scalar_lea.vmem %s1850_s24, 256  ;;  %p1741_p12 = scmp.lt.s32.totalorder %s1850_s24, %s1850_s24 }
  0x1b   :  { %p1737_p11 = scmp.ne.s32.totalorder %s1850_s24, %s1736_s20  ;;  %p1742_p13 = scmp.lt.s32.totalorder %s1736_s20, %s1736_s20 }
  0x1d   :  { %p1743_p0 = por %p1742_p13, %p1741_p12 }
  0x1f   :  { %p1744_p1 = pnand %p1743_p0, %p1737_p11 }
  0x21   :  { %1747 = shalt.err (!%p1744_p1)
}
  0x22   :  { %25 = dma.hbm_to_vmem [thread:$0]  %s2041_s0, 256, %s1850_s24, [#allocation3], %s1800_s9, %s1800_s9, %s1801_s10  }
  0x23   :  { %s1802_s22 = smov [#allocation7]   ;;  %s1748_s27 = scalar_lea.hbm %s2044_s3, 512 }
  0x24   :  { %s45_s23 = sshll.u32 %s1802_s22, 4  ;;  %p1749_p2 = scmp.ne.s32.totalorder %s2044_s3, %s1748_s27  ;;  %s46_s23 = int_to_ptr.vmem [resolvable:$true] %s45_s23 }
  0x25   :  { %p1752_p3 = scmp.lt.u32.totalorder %s1748_s27, %s2044_s3 }
  0x27   :  { %p1754_p4 = pnand %p1752_p3, %p1749_p2 }
  0x29   :  { %1757 = shalt.err (!%p1754_p4)
}
  0x2a   :  { %s1758_s8 = scalar_lea.vmem %s46_s23, 512  ;;  %p1763_p6 = scmp.lt.s32.totalorder %s46_s23, %s46_s23 }
  0x2b   :  { %p1759_p5 = scmp.ne.s32.totalorder %s46_s23, %s1758_s8  ;;  %p1764_p7 = scmp.lt.s32.totalorder %s1758_s8, %s1758_s8 }
  0x2d   :  { %p1765_p8 = por %p1764_p7, %p1763_p6 }
  0x2f   :  { %p1766_p9 = pnand %p1765_p8, %p1759_p5 }
  0x31   :  { %1769 = shalt.err (!%p1766_p9)
}
  0x32   :  { %51 = dma.hbm_to_vmem [thread:$0]  %s2044_s3, 512, %s46_s23, [#allocation6], %s1800_s9, %s1800_s9, %s1801_s10  }
  0x33   :  { %1792 = dma.done.wait [#allocation3], 256  }
  0x34   :  { %1793 = vsyncadd [#allocation3], 4294967040 }
  0x35   :  { %1794 = dma.done.wait [#allocation6], 2048  }
  0x36   :  { %1795 = vsyncadd [#allocation6], 4294965248  ;;  %v67_v0 = vld [vmem:[#allocation5] sm:$0xff]  ;;  %v68_v1 = vld [vmem:[#allocation5 + $0x8] sm:$0xff]  ;;  %vm86_vm0 = vcmask 785408   ;;  %vm181_vm1 = vcmask 64512  }
  0x37   :  { %v69_v2 = vld [vmem:[#allocation5 + $0x10] sm:$0xff]  ;;  %v1545_v3 = vpack.c.bf16 %v68_v1, %v67_v0  ;;  %v70_v4 = vld [vmem:[#allocation5 + $0x18] sm:$0xff]  ;;  %v71_v6 = vld [vmem:[#allocation5 + $0x20] sm:$0xff]  ;;  %s1803_s12 = smov 96   ;;  %vm269_vm3 = vcmask 130048   ;;  %s1804_s16 = smov 64  }
  0x38   :  { %v1549_v5 = vpack.c.bf16 %v70_v4, %v69_v2  ;;  %v72_v7 = vld [vmem:[#allocation5 + $0x28] sm:$0xff]  ;;  %v65_v8 = vld [vmem:[#allocation2] sm:$0xff]  ;;  %v74_v11 = vld [vmem:[#allocation5 + $0x38] sm:$0xff]  ;;  %s1805_s17 = smov 88   ;;  %s1807_s18 = smov 56   ;;  %vm1327_vm4 = vcmask 261120  }
  0x39   :  { %1546 = vmatprep.subr.bf16.mxu0 %v1545_v3  ;;  %v1553_v9 = vpack.c.bf16 %v72_v7, %v71_v6  ;;  %1466 = vmatprep.mubr.msk.f32.mxu0 %vm86_vm0, %v65_v8  ;;  %v73_v10 = vld [vmem:[#allocation5 + $0x30] sm:$0xff]  ;;  %v75_v13 = vld [vmem:[#allocation5 + $0x40] sm:$0xff]  ;;  %v76_v14 = vld [vmem:[#allocation5 + $0x48] sm:$0xff]  ;;  %s1808_s19 = smov 80   ;;  %s1809_s20 = smov 112  }
  0x3a   :  { %1548 = vmatpush3.bf16.msra.mxu0 %v1545_v3  ;;  %v1557_v12 = vpack.c.bf16 %v74_v11, %v73_v10  ;;  %v1561_v15 = vpack.c.bf16 %v76_v14, %v75_v13  ;;  %v77_v16 = vld [vmem:[#allocation5 + $0x50] sm:$0xff]  ;;  %v78_v17 = vld [vmem:[#allocation5 + $0x58] sm:$0xff]  ;;  %vm1920_vm2 = vmpackc.low %vm181_vm1, %vm181_vm1  ;;  %s1810_s1 = smov 72   ;;  %s1811_s21 = smov 104  }
  0x3b   :  { %1550 = vmatprep.subr.bf16.mxu0 %v1549_v5  ;;  %v1565_v18 = vpack.c.bf16 %v78_v17, %v77_v16  ;;  %v66_v19 = vld [vmem:[#allocation2 + $0x8] sm:$0xff]  ;;  %v1348_v20 = vld [vmem:[%s2043_s2] ss:$0 sm:$0xff]  ;;  %s1812_s22 = smov 48   ;;  %s1813_s23 = smov 40  }
  0x3c   :  { %v1933_v32 = vld [vmem:[%s2046_s5 + $0x8] sm:$0xff]  ;;  %v1938_v35 = vld [vmem:[%s2046_s5] sm:$0xff]  ;;  %s1806_s5 = smov 120   ;;  %s1814_s27 = smov [#allocation8]  }
  0x3d   :  { %s1335_s28 = sshll.u32 %s1814_s27, 4  ;;  %s1336_s28 = int_to_ptr.vmem [resolvable:$true] %s1335_s28 }
  0x3e   :  { %1552 = vmatpush3.bf16.msra.mxu0 %v1549_v5  ;;  %s1770_s29 = scalar_lea.vmem %s1336_s28, 256  ;;  %p1775_p11 = scmp.lt.s32.totalorder %s1336_s28, %s1336_s28 }
  0x3f   :  { %1554 = vmatprep.subr.bf16.mxu0 %v1553_v9  ;;  %p1771_p10 = scmp.ne.s32.totalorder %s1336_s28, %s1770_s29  ;;  %p1776_p12 = scmp.lt.s32.totalorder %s1770_s29, %s1770_s29 }
  0x41   :  { %p1777_p13 = por %p1776_p12, %p1775_p11 }
  0x42   :  { %1556 = vmatpush3.bf16.msra.mxu0 %v1553_v9 }
  0x43   :  { %1558 = vmatprep.subr.bf16.mxu0 %v1557_v12  ;;  %p1778_p0 = pnand %p1777_p13, %p1771_p10 }
  0x46   :  { %1560 = vmatpush3.bf16.msra.mxu0 %v1557_v12 }
  0x47   :  { %1562 = vmatprep.subr.bf16.mxu0 %v1561_v15 }
  0x4a   :  { %1564 = vmatpush3.bf16.msra.mxu0 %v1561_v15 }
  0x4b   :  { %1566 = vmatprep.subr.bf16.mxu0 %v1565_v18 }
  0x4e   :  { %1568 = vmatpush3.bf16.msra.mxu0 %v1565_v18 }
  0x51   :  { %1467 = vmatmul.mubr.msk.f32.vlgmr.msra.gmra.mrb[0].mxu0 %vm86_vm0, %v66_v19  ;;  %v169_v19 = vld [vmem:[#allocation7 + $0x8] sm:$0xff] }
 0x124   :  { %v1468_v21 = vpop.f32.mrb[0].mxu0 }
 0x125   :  { %v1907_v22 = vadd.f32 %v1468_v21, %v1348_v20  ;;  %v159_v23 = vpop.f32.mrb[1].mxu0 }
 0x126   :  { %v1909_v24 = vadd.f32 %v1348_v20, %v159_v23  ;;  %v168_v23 = vld [vmem:[#allocation7] sm:$0xff] }
 0x127   :  { %1502 = vmatprep.subr.mxu0 %v168_v23 }
 0x128   :  { %1473 = vmatprep.mubr.msk.f32.mxu1 %vm181_vm1, %v1909_v24  ;;  %v1915_v25 = vpack.i.bf16 %v1907_v22, %v1909_v24  ;;  %1503 = vmatpush3.msra.mxu0 %v168_v23 }
 0x12a   :  { %1633 = vrot.lane.b32.xlu0 %v1915_v25, %s1803_s12 }
 0x19c   :  { %v1634_v26 = vpop.permute.xlu0 %1633 }
 0x19d   :  { %v1636_v27 = vunpack.i.h.bf16 %v1634_v26  ;;  %v1635_v28 = vunpack.i.l.bf16 %v1634_v26 }
 0x19f   :  { %v1569_v30 = vpack.c.bf16 %v1636_v27, %v1635_v28 }
 0x1a1   :  { %1571 = vmatprep.subr.msk.bf16.mxu1 %vm1920_vm2, %v1569_v30 }
 0x1a2   :  { %1574 = vmatpush3.bf16.xpose.msk.msra.mxu1 %vm1920_vm2, %v1569_v30 }
 0x1a9   :  { %1474 = vmatmul.mubr.msk.f32.vlgmr.msra.gmra.mrb[0].mxu1 %vm181_vm1, %v1907_v22 }
 0x27c   :  { %v1475_v31 = vpop.f32.mrb[0].mxu1 }
 0x27d   :  { %v266_v33 = vmul.f32 0.35355338, %v1475_v31  ;;  %v256_v34 = vpop.f32.mrb[1].mxu1 }
 0x27e   :  { %v265_v36 = vmul.f32 0.35355338, %v256_v34 }
 0x27f   :  { %v268_v37 = vadd.f32 %v266_v33, %v1933_v32 }
 0x280   :  { %v267_v38 = vadd.f32 %v265_v36, %v1938_v35 }
 0x281   :  { %v273_v39 = vsel %vm269_vm3, %v268_v37, -inf }
 0x282   :  { %274 = vmax.xlane.f32.xlu1 %v273_v39  ;;  %v270_v40 = vsel %vm269_vm3, %v267_v38, -inf }
 0x283   :  { %271 = vmax.xlane.f32.xlu0 %v270_v40 }
 0x293   :  { %1638 = vrot.lane.b32.xlu1 %v1915_v25, %s1804_s16 }
 0x297   :  { %1643 = vrot.lane.b32.xlu1 %v1915_v25, %s1805_s17 }
 0x29b   :  { %379 = vrot.lane.b32.xlu1 %v1909_v24, %s1806_s5 }
 0x29f   :  { %381 = vrot.lane.b32.xlu1 %v1907_v22, %s1806_s5 }
 0x30f   :  { %v275_v41 = vpop.xlane.xlu1 %274 }
 0x310   :  { %v277_v42 = vsub.f32 %v268_v37, %v275_v41  ;;  %v272_v43 = vpop.xlane.xlu0 %271 }
 0x311   :  { %v276_v44 = vsub.f32 %v267_v38, %v272_v43 }
 0x312   :  { %v280_v45 = vmul.f32 1.442695, %v277_v42 }
 0x313   :  { %v278_v46 = vmul.f32 1.442695, %v276_v44  ;;  %v1639_v47 = vpop.permute.xlu1 %1638 }
 0x314   :  { %v1641_v48 = vunpack.i.h.bf16 %v1639_v47  ;;  %v1640_v49 = vunpack.i.l.bf16 %v1639_v47 }
 0x315   :  { %1672 = vpow2.f32 %v278_v46 }
 0x316   :  { %1674 = vpow2.f32 %v280_v45  ;;  %v1575_v50 = vpack.c.bf16 %v1641_v48, %v1640_v49 }
 0x317   :  { %v1644_v51 = vpop.permute.xlu1 %1643 }
 0x318   :  { %v1646_v52 = vunpack.i.h.bf16 %v1644_v51  ;;  %v1645_v53 = vunpack.i.l.bf16 %v1644_v51  ;;  %1576 = vmatprep.subr.bf16.mxu1 %v1575_v50 }
 0x319   :  { %1578 = vmatpush3.bf16.msra.mxu1 %v1575_v50 }
 0x31a   :  { %v1579_v54 = vpack.c.bf16 %v1646_v52, %v1645_v53 }
 0x31b   :  { %v380_v57 = vpop.permute.xlu1 %379 }
 0x31c   :  { %1581 = vmatprep.subr.msk.bf16.mxu1 %vm1920_vm2, %v1579_v54 }
 0x31f   :  { %v1673_v55 = vpop.eup %1672  ;;  %v382_v58 = vpop.permute.xlu1 %381 }
 0x320   :  { %v1675_v56 = vpop.eup %1674  ;;  %1480 = vmatprep.mubr.msk.f32.mxu1 %vm269_vm3, %v1673_v55  ;;  %v282_v21 = vsel %vm269_vm3, %v1673_v55, 0.0 }
 0x321   :  { %1481 = vmatmul.mubr.msk.f32.vlgmr.msra.gmra.mrb[2].mxu1 %vm269_vm3, %v1675_v56  ;;  %v285_v20 = vsel %vm269_vm3, %v1675_v56, 0.0 }
 0x322   :  { %1584 = vmatpush3.bf16.xpose.msk.msra.mxu1 %vm1920_vm2, %v1579_v54  ;;  %1487 = vmatprep.mubr.msk.f32.mxu1 %vm181_vm1, %v380_v57 }
 0x329   :  { %1488 = vmatmul.mubr.msk.f32.vlgmr.msra.gmra.mrb[4].mxu1 %vm181_vm1, %v382_v58 }
 0x3f4   :  { %v1956_v59 = vpop.f32.mrb[2].mxu1 }
 0x3f5   :  { %v1958_v60 = vpop.f32.mrb[3].mxu1 }
 0x3fc   :  { %v1489_v61 = vpop.f32.mrb[4].mxu1 }
 0x3fd   :  { %v471_v62 = vmul.f32 0.35355338, %v1489_v61  ;;  %v461_v63 = vpop.f32.mrb[5].mxu1 }
 0x3fe   :  { %v470_v0 = vmul.f32 0.35355338, %v461_v63 }
 0x3ff   :  { %v473_v1 = vadd.f32 %v471_v62, %v1933_v32 }
 0x400   :  { %v472_v2 = vadd.f32 %v470_v0, %v1938_v35 }
 0x401   :  { %v477_v3 = vsel %vm269_vm3, %v473_v1, -inf }
 0x402   :  { %478 = vmax.xlane.f32.xlu0 %v477_v3  ;;  %v474_v4 = vsel %vm269_vm3, %v472_v2, -inf }
 0x403   :  { %475 = vmax.xlane.f32.xlu1 %v474_v4 }
 0x418   :  { %1648 = vrot.lane.b32.xlu0 %v1915_v25, %s1807_s18 }
 0x48f   :  { %v479_v5 = vpop.xlane.xlu0 %478 }
 0x490   :  { %v481_v6 = vsub.f32 %v473_v1, %v479_v5  ;;  %v476_v7 = vpop.xlane.xlu1 %475 }
 0x491   :  { %v480_v8 = vsub.f32 %v472_v2, %v476_v7 }
 0x492   :  { %v484_v9 = vmul.f32 1.442695, %v481_v6 }
 0x493   :  { %v482_v10 = vmul.f32 1.442695, %v480_v8  ;;  %v1649_v11 = vpop.permute.xlu0 %1648 }
 0x494   :  { %1676 = vpow2.f32 %v484_v9  ;;  %v1651_v12 = vunpack.i.h.bf16 %v1649_v11  ;;  %v1650_v13 = vunpack.i.l.bf16 %v1649_v11 }
 0x495   :  { %1678 = vpow2.f32 %v482_v10 }
 0x496   :  { %v1585_v14 = vpack.c.bf16 %v1651_v12, %v1650_v13  ;;  %v170_v13 = vld [vmem:[#allocation7 + $0x10] sm:$0xff] }
 0x498   :  { %1586 = vmatprep.subr.bf16.mxu1 %v1585_v14 }
 0x499   :  { %1588 = vmatpush3.bf16.msra.mxu1 %v1585_v14 }
 0x49a   :  { %1497 = vmatprep.subr.mxu1 %v169_v19 }
 0x49e   :  { %v1677_v15 = vpop.eup %1676 }
 0x49f   :  { %v1679_v16 = vpop.eup %1678  ;;  %v489_v17 = vsel %vm269_vm3, %v1677_v15, 0.0 }
 0x4a0   :  { %490 = vadd.xlane.f32.xlu1 %v489_v17  ;;  %1494 = vmatprep.mubr.msk.f32.mxu1 %vm269_vm3, %v1679_v16  ;;  %v486_v18 = vsel %vm269_vm3, %v1679_v16, 0.0 }
 0x4a1   :  { %1495 = vmatmul.mubr.msk.f32.vlgmr.msra.gmra.mrb[6].mxu1 %vm269_vm3, %v1677_v15  ;;  %487 = vadd.xlane.f32.xlu0 %v486_v18 }
 0x4a2   :  { %1498 = vmatpush3.msra.mxu1 %v169_v19 }
 0x4b1   :  { %1653 = vrot.lane.b32.xlu1 %v1915_v25, %s1808_s19 }
 0x4b5   :  { %745 = vrot.lane.b32.xlu1 %v1909_v24, %s1809_s20 }
 0x4b7   :  { %747 = vrot.lane.b32.xlu0 %v1907_v22, %s1809_s20 }
 0x4b9   :  { %1658 = vrot.lane.b32.xlu1 %v1915_v25, %s1810_s1 }
 0x4bd   :  { %1032 = vrot.lane.b32.xlu1 %v1909_v24, %s1811_s21 }
 0x4c1   :  { %1034 = vrot.lane.b32.xlu1 %v1907_v22, %s1811_s21 }
 0x4d6   :  { %286 = vadd.xlane.f32.xlu0 %v285_v20 }
 0x4e5   :  { %283 = vadd.xlane.f32.xlu1 %v282_v21 }
 0x52d   :  { %v491_v26 = vpop.xlane.xlu1 %490 }
 0x52e   :  { %v488_v22 = vpop.xlane.xlu0 %487 }
 0x52f   :  { %1680 = vrcp.f32 %v488_v22 }
 0x530   :  { %1682 = vrcp.f32 %v491_v26 }
 0x531   :  { %v1654_v27 = vpop.permute.xlu1 %1653 }
 0x532   :  { %v1656_v28 = vunpack.i.h.bf16 %v1654_v27  ;;  %v1655_v30 = vunpack.i.l.bf16 %v1654_v27  ;;  %v748_v36 = vpop.permute.xlu0 %747 }
 0x534   :  { %v1589_v31 = vpack.c.bf16 %v1656_v28, %v1655_v30 }
 0x535   :  { %v746_v24 = vpop.permute.xlu1 %745 }
 0x536   :  { %1591 = vmatprep.subr.msk.bf16.mxu1 %vm1920_vm2, %v1589_v31 }
 0x539   :  { %v1659_v33 = vpop.permute.xlu1 %1658  ;;  %v1681_v41 = vpop.eup %1680 }
 0x53a   :  { %v1661_v42 = vunpack.i.h.bf16 %v1659_v33  ;;  %v1660_v43 = vunpack.i.l.bf16 %v1659_v33  ;;  %v1683_v45 = vpop.eup %1682 }
 0x53c   :  { %v1599_v48 = vpack.c.bf16 %v1661_v42, %v1660_v43 }
 0x53d   :  { %v1033_v34 = vpop.permute.xlu1 %1032 }
 0x541   :  { %v1035_v37 = vpop.permute.xlu1 %1034 }
 0x563   :  { %v287_v38 = vpop.xlane.xlu0 %286 }
 0x564   :  { %1684 = vrcp.f32 %v287_v38 }
 0x56e   :  { %v1685_v49 = vpop.eup %1684 }
 0x56f   :  { %v378_v52 = vmul.f32 %v1685_v49, %v1956_v59 }
 0x572   :  { %v284_v39 = vpop.xlane.xlu1 %283 }
 0x573   :  { %1686 = vrcp.f32 %v284_v39 }
 0x574   :  { %v1496_v40 = vpop.f32.mrb[6].mxu1 }
 0x575   :  { %v570_v44 = vpop.f32.mrb[7].mxu1  ;;  %v582_v47 = vmul.f32 %v1683_v45, %v1496_v40 }
 0x576   :  { %v581_v46 = vmul.f32 %v1681_v41, %v570_v44  ;;  %v171_v44 = vld [vmem:[#allocation7 + $0x18] sm:$0xff] }
 0x578   :  { %1499 = vmatprep.mubr.msk.f32.mxu1 %vm181_vm1, %v581_v46 }
 0x579   :  { %1500 = vmatmul.mubr.msk.f32.vlgmr.msra.gmra.mrb[8].mxu1 %vm181_vm1, %v582_v47 }
 0x57a   :  { %1594 = vmatpush3.bf16.xpose.msk.msra.mxu1 %vm1920_vm2, %v1589_v31  ;;  %1511 = vmatprep.mubr.msk.f32.mxu1 %vm181_vm1, %v746_v24 }
 0x57b   :  { %1601 = vmatprep.subr.msk.bf16.mxu1 %vm1920_vm2, %v1599_v48 }
 0x57d   :  { %v1687_v50 = vpop.eup %1686 }
 0x57e   :  { %v377_v51 = vmul.f32 %v1687_v50, %v1958_v60 }
 0x580   :  { %1504 = vmatprep.mubr.msk.f32.mxu0 %vm181_vm1, %v377_v51 }
 0x581   :  { %1512 = vmatmul.mubr.msk.f32.vlgmr.msra.gmra.mrb[10].mxu1 %vm181_vm1, %v748_v36  ;;  %1505 = vmatmul.mubr.msk.f32.vlgmr.msra.gmra.mrb[2].mxu0 %vm181_vm1, %v378_v52 }
 0x582   :  { %1604 = vmatpush3.bf16.xpose.msk.msra.mxu1 %vm1920_vm2, %v1599_v48  ;;  %1530 = vmatprep.mubr.msk.f32.mxu1 %vm181_vm1, %v1033_v34 }
 0x589   :  { %1531 = vmatmul.mubr.msk.f32.vlgmr.msra.gmra.mrb[12].mxu1 %vm181_vm1, %v1035_v37 }
 0x64c   :  { %v1995_v53 = vpop.f32.mrb[8].mxu1 }
 0x64d   :  { %v1997_v54 = vpop.f32.mrb[9].mxu1 }
 0x654   :  { %v1513_v55 = vpop.f32.mrb[10].mxu1 }
 0x655   :  { %v837_v56 = vmul.f32 0.35355338, %v1513_v55  ;;  %v827_v57 = vpop.f32.mrb[11].mxu1  ;;  %v1383_v55 = vld [vmem:[%s2045_s4] ss:$0 sm:$0xff] }
 0x656   :  { %v836_v58 = vmul.f32 0.35355338, %v827_v57 }
 0x657   :  { %v839_v59 = vadd.f32 %v837_v56, %v1933_v32 }
 0x658   :  { %v838_v60 = vadd.f32 %v836_v58, %v1938_v35 }
 0x659   :  { %v843_v61 = vsel %vm269_vm3, %v839_v59, -inf }
 0x65a   :  { %844 = vmax.xlane.f32.xlu0 %v843_v61  ;;  %v840_v29 = vsel %vm269_vm3, %v838_v60, -inf }
 0x65b   :  { %841 = vmax.xlane.f32.xlu1 %v840_v29 }
 0x65c   :  { %v1532_v62 = vpop.f32.mrb[12].mxu1 }
 0x65d   :  { %v1114_v63 = vpop.f32.mrb[13].mxu1  ;;  %v1124_v20 = vmul.f32 0.35355338, %v1532_v62 }
 0x65e   :  { %v1123_v0 = vmul.f32 0.35355338, %v1114_v63 }
 0x65f   :  { %v1126_v27 = vadd.f32 %v1124_v20, %v1933_v32 }
 0x660   :  { %v1125_v1 = vadd.f32 %v1123_v0, %v1938_v35 }
 0x661   :  { %v1130_v28 = vsel %vm269_vm3, %v1126_v27, -inf }
 0x662   :  { %v1127_v2 = vsel %vm269_vm3, %v1125_v1, -inf }
 0x663   :  { %1128 = vmax.xlane.f32.xlu0 %v1127_v2 }
 0x66c   :  { %1663 = vrot.lane.b32.xlu1 %v1915_v25, %s1812_s22 }
 0x670   :  { %1668 = vrot.lane.b32.xlu1 %v1915_v25, %s1813_s23 }
 0x6e7   :  { %v845_v3 = vpop.xlane.xlu0 %844 }
 0x6e8   :  { %v847_v4 = vsub.f32 %v839_v59, %v845_v3  ;;  %v842_v5 = vpop.xlane.xlu1 %841 }
 0x6e9   :  { %v846_v6 = vsub.f32 %v838_v60, %v842_v5 }
 0x6ea   :  { %v850_v7 = vmul.f32 1.442695, %v847_v4 }
 0x6eb   :  { %v848_v8 = vmul.f32 1.442695, %v846_v6 }
 0x6ec   :  { %1688 = vpow2.f32 %v850_v7  ;;  %v1664_v9 = vpop.permute.xlu1 %1663 }
 0x6ed   :  { %1690 = vpow2.f32 %v848_v8  ;;  %v1666_v10 = vunpack.i.h.bf16 %v1664_v9  ;;  %v1665_v35 = vunpack.i.l.bf16 %v1664_v9 }
 0x6ef   :  { %v1595_v11 = vpack.c.bf16 %v1666_v10, %v1665_v35 }
 0x6f0   :  { %v1129_v12 = vpop.xlane.xlu0 %1128  ;;  %v1669_v15 = vpop.permute.xlu1 %1668 }
 0x6f1   :  { %v1133_v14 = vsub.f32 %v1125_v1, %v1129_v12  ;;  %1596 = vmatprep.subr.bf16.mxu0 %v1595_v11  ;;  %v1671_v25 = vunpack.i.h.bf16 %v1669_v15  ;;  %v1670_v17 = vunpack.i.l.bf16 %v1669_v15 }
 0x6f2   :  { %1598 = vmatpush3.bf16.msra.mxu0 %v1595_v11 }
 0x6f3   :  { %v1135_v16 = vmul.f32 1.442695, %v1133_v14  ;;  %1521 = vmatprep.subr.mxu0 %v170_v13  ;;  %v1605_v23 = vpack.c.bf16 %v1671_v25, %v1670_v17 }
 0x6f5   :  { %1692 = vpow2.f32 %v1135_v16 }
 0x6f6   :  { %v1689_v18 = vpop.eup %1688 }
 0x6f7   :  { %v1691_v19 = vpop.eup %1690  ;;  %v855_v21 = vsel %vm269_vm3, %v1689_v18, 0.0 }
 0x6f8   :  { %856 = vadd.xlane.f32.xlu0 %v855_v21  ;;  %1518 = vmatprep.mubr.msk.f32.mxu0 %vm269_vm3, %v1691_v19  ;;  %v852_v26 = vsel %vm269_vm3, %v1691_v19, 0.0 }
 0x6f9   :  { %1519 = vmatmul.mubr.msk.f32.vlgmr.msra.gmra.mrb[4].mxu0 %vm269_vm3, %v1689_v18 }
 0x6fa   :  { %1522 = vmatpush3.msra.mxu0 %v170_v13 }
 0x6fb   :  { %1606 = vmatprep.subr.bf16.mxu0 %v1605_v23 }
 0x6fc   :  { %853 = vadd.xlane.f32.xlu0 %v852_v26 }
 0x6ff   :  { %v1693_v30 = vpop.eup %1692 }
 0x700   :  { %1131 = vmax.xlane.f32.xlu0 %v1130_v28  ;;  %v1139_v31 = vsel %vm269_vm3, %v1693_v30, 0.0 }
 0x704   :  { %1140 = vadd.xlane.f32.xlu0 %v1139_v31 }
 0x785   :  { %v857_v24 = vpop.xlane.xlu0 %856 }
 0x789   :  { %v854_v33 = vpop.xlane.xlu0 %853 }
 0x78d   :  { %v1132_v22 = vpop.xlane.xlu0 %1131 }
 0x78e   :  { %v1134_v34 = vsub.f32 %v1126_v27, %v1132_v22 }
 0x790   :  { %v1137_v36 = vmul.f32 1.442695, %v1134_v34 }
 0x791   :  { %v1141_v45 = vpop.xlane.xlu0 %1140 }
 0x792   :  { %1694 = vpow2.f32 %v1137_v36 }
 0x793   :  { %1696 = vrcp.f32 %v854_v33 }
 0x794   :  { %1698 = vrcp.f32 %v857_v24 }
 0x795   :  { %1700 = vrcp.f32 %v1141_v45 }
 0x79c   :  { %v1695_v37 = vpop.eup %1694 }
 0x79d   :  { %v1142_v38 = vsel %vm269_vm3, %v1695_v37, 0.0  ;;  %v1697_v39 = vpop.eup %1696 }
 0x79e   :  { %1143 = vadd.xlane.f32.xlu1 %v1142_v38  ;;  %v1699_v41 = vpop.eup %1698 }
 0x79f   :  { %v1701_v48 = vpop.eup %1700 }
 0x7cc   :  { %v1520_v32 = vpop.f32.mrb[4].mxu0 }
 0x7cd   :  { %v936_v40 = vpop.f32.mrb[5].mxu0  ;;  %v948_v43 = vmul.f32 %v1699_v41, %v1520_v32 }
 0x7ce   :  { %v947_v42 = vmul.f32 %v1697_v39, %v936_v40 }
 0x7d0   :  { %1523 = vmatprep.mubr.msk.f32.mxu0 %vm181_vm1, %v947_v42 }
 0x7d1   :  { %1524 = vmatmul.mubr.msk.f32.vlgmr.msra.gmra.mrb[2].mxu0 %vm181_vm1, %v948_v43 }
 0x7d2   :  { %1608 = vmatpush3.bf16.msra.mxu0 %v1605_v23  ;;  %1537 = vmatprep.mubr.msk.f32.mxu0 %vm269_vm3, %v1693_v30 }
 0x7d3   :  { %1540 = vmatprep.subr.mxu0 %v171_v44 }
 0x7d5   :  { %1538 = vmatmul.mubr.msk.f32.vlgmr.msra.gmra.mrb[6].mxu0 %vm269_vm3, %v1695_v37 }
 0x7d6   :  { %1541 = vmatpush3.msra.mxu0 %v171_v44 }
 0x82b   :  { %v1144_v46 = vpop.xlane.xlu1 %1143 }
 0x82c   :  { %1702 = vrcp.f32 %v1144_v46 }
 0x836   :  { %v1703_v50 = vpop.eup %1702 }
 0x8a8   :  { %v1539_v47 = vpop.f32.mrb[6].mxu0 }
 0x8a9   :  { %v1223_v49 = vpop.f32.mrb[7].mxu0  ;;  %v1235_v52 = vmul.f32 %v1703_v50, %v1539_v47 }
 0x8aa   :  { %v1234_v51 = vmul.f32 %v1701_v48, %v1223_v49 }
 0x8ac   :  { %1542 = vmatprep.mubr.msk.f32.mxu0 %vm181_vm1, %v1234_v51 }
 0x8ad   :  { %1543 = vmatmul.mubr.msk.f32.vlgmr.msra.gmra.mrb[2].mxu0 %vm181_vm1, %v1235_v52 }
 0x980   :  { %v1544_v56 = vpop.f32.mrb[2].mxu0 }
 0x981   :  { %v1609_v57 = vadd.f32 %v1544_v56, %v1995_v53  ;;  %v1308_v58 = vpop.f32.mrb[3].mxu0 }
 0x982   :  { %v1610_v59 = vadd.f32 %v1308_v58, %v1997_v54 }
 0x983   :  { %v1326_v60 = vadd.f32 %v1609_v57, %v1383_v55 }
 0x984   :  { %v1325_v61 = vadd.f32 %v1610_v59, %v1383_v55 }
 0x985   :  { %1329 = vst.msk [vmem:[#allocation8 + $0x8] sm:$0xff] %vm1327_vm4, %v1326_v60 }
 0x986   :  { %1328 = vst.msk [vmem:[#allocation8] sm:$0xff] %vm1327_vm4, %v1325_v61 }
 0x987   :  { %1781 = shalt.err (!%p1778_p0)
}
 0x988   :  { %s1782_s7 = scalar_lea.hbm %s2047_s6, 256 }
 0x989   :  { %p1783_p1 = scmp.ne.s32.totalorder %s2047_s6, %s1782_s7  ;;  %p1786_p2 = scmp.lt.u32.totalorder %s1782_s7, %s2047_s6 }
 0x98b   :  { %p1788_p3 = pnand %p1786_p2, %p1783_p1 }
 0x98d   :  { %1791 = shalt.err (!%p1788_p3)
}
 0x98e   :  { %1341 = dma.vmem_to_hbm [thread:$0]  %s1336_s28, 256, %s2047_s6, [#allocation4], %s1800_s9, %s1800_s9, %s1801_s10  }
 0x98f   :  { %1796 = dma.done.wait [#allocation4], 256  }
 0x990   :  { %1797 = vsyncadd [#allocation4], 4294967040 }
 0x991   :  { %1345 = vsyncpa [#allocation3], 1 }
 0x992   :  { %1346 = vsyncpa [#allocation6], 1 }
 0x993   :  { %1347 = vsyncpa [#allocation4], 1 }

</bundles_post_ra>
